<compile_context>
chip_gen: v6e
topology: v6e:2x2x1
jax: 0.10.0
libtpu: 0.0.40
codegen_flags: <defaults>
</compile_context>

<pallas_src>
import jax
import jax.numpy as jnp
from jax.experimental import pallas as pl
from jax.experimental.pallas import tpu as pltpu


def _round_up(x, m):
    return ((x + m - 1) // m) * m


def _cdiv(a, b):
    return (a + b - 1) // b


def _ce_rows_kernel(logits_ref, targets_ref, loss_ref):
    """Per-row cross entropy for one row tile.

    logits_ref : (TILE_N, C) VMEM, input dtype (bf16/f32), upcast to f32 here
    targets_ref: (1, TILE_N) VMEM, int32 class indices (lane-dense)
    loss_ref   : (1, TILE_N) VMEM, f32 per-row loss (lane-dense; padded rows discarded)
    """
    x = logits_ref[...].astype(jnp.float32)                     # (tn, C)
    tn, c = x.shape

    tgt = jnp.transpose(targets_ref[...])                       # (tn, 1) int32 (XLU)

    # Stable log-sum-exp and target gather in one sweep over the shifted logits.
    m = jnp.max(x, axis=-1, keepdims=True)                      # (tn, 1)
    shifted = x - m                                              # (tn, C)
    sum_e = jnp.sum(jnp.exp(shifted), axis=-1, keepdims=True)    # one exp per element, f32
    col = jax.lax.broadcasted_iota(jnp.int32, (tn, c), 1)        # (tn, C)
    tgt_shift = jnp.sum(jnp.where(col == tgt, shifted, 0.0),
                        axis=-1, keepdims=True)                  # (tn, 1)

    # lse - target_logit = (m + log(sum_e)) - (m + tgt_shift) = log(sum_e) - tgt_shift
    loss = jnp.log(sum_e) - tgt_shift                            # (tn, 1)
    loss_ref[...] = jnp.transpose(loss)                          # (1, tn) lane-dense store


def inner_loss(inner_product, patch_targets, *, tile_n=None):
    """Pallas equivalent of InnerLoss.forward (mean cross-entropy over rows)."""
    n, c = inner_product.shape
    dtype = inner_product.dtype
    itemsize = jnp.dtype(dtype).itemsize
    c_lanes = _round_up(c, 128)  # VMEM lane footprint of one logits row

    # Generation-aware VMEM limit (v7x: 64 MiB physical -> 48 MiB; v5e/v6e: 128 -> 96/100).
    try:
        vmem_cap = int(pltpu.get_tpu_info().vmem_capacity_bytes)
    except Exception:
        vmem_cap = 64 * 1024 * 1024  # v7x-safe fallback
    vmem_limit = int(min(100 * 1024 * 1024, (vmem_cap * 3) // 4))

    # Row tile: account for double-buffered input tile plus ~5 full-tile f32/i32
    # temporaries (upcast/shifted/exp/iota/select). Multiple of 128 -> lane-dense output.
    if tile_n is None:
        per_row_bytes = c_lanes * (2 * itemsize + 20)
        tile_n = (vmem_limit // 2) // per_row_bytes
    tile_n = max(128, (int(tile_n) // 128) * 128)
    tile_n = min(tile_n, 1024)
    if n > 128:
        # keep >=2 row tiles so ("parallel",) can spread work across both v7x TensorCores
        tile_n = min(tile_n, _round_up(_cdiv(n, 2), 128))
    tile_n = min(tile_n, _round_up(n, 128))
    # TODO(synk): very large C would need a class-axis grid with an online-softmax
    # accumulator; with the 128-row minimum tile a huge C could exceed VMEM.

    num_tiles = _cdiv(n, tile_n)
    n_pad = num_tiles * tile_n

    # Lane-dense targets; only this tiny int32 array is padded (logits are never copied).
    targets = patch_targets.astype(jnp.int32).reshape(1, n)
    if n_pad > n:
        targets = jnp.pad(targets, ((0, 0), (0, n_pad - n)))

    per_row = pl.pallas_call(
        _ce_rows_kernel,
        out_shape=jax.ShapeDtypeStruct((1, n_pad), jnp.float32),
        grid=(num_tiles,),
        in_specs=[
            pl.BlockSpec((tile_n, c), lambda i: (i, 0)),   # logits row tile, full class dim
            pl.BlockSpec((1, tile_n), lambda i: (0, i)),   # lane-dense targets tile
        ],
        out_specs=pl.BlockSpec((1, tile_n), lambda i: (0, i)),
        compiler_params=pltpu.CompilerParams(
            dimension_semantics=("parallel",),             # row tiles are independent
            vmem_limit_bytes=vmem_limit,
        ),
        cost_estimate=pl.CostEstimate(
            flops=5 * n * c,
            transcendentals=n * c,
            bytes_accessed=n * c * itemsize + n * 4 + n * 4,
        ),
    )(inner_product, targets)

    # Final mean reduction in the wrapper (drop padded rows); tiny vs. logits traffic.
    return jnp.sum(per_row[0, :n]) * (1.0 / n)


if __name__ == "__main__":
    key = jax.random.PRNGKey(0)
    k1, k2, k3, k4 = jax.random.split(key, 4)

    # Case 1: tiny demo shape consistent with the module (N samples x C classes).
    N, C = 8, 32
    inner_product = jax.random.normal(k1, (N, C), dtype=jnp.float32)
    patch_targets = jax.random.randint(k2, (N,), 0, C, dtype=jnp.int32)
    loss = jax.block_until_ready(inner_loss(inner_product, patch_targets))
    ref = jnp.mean(
        jax.nn.logsumexp(inner_product, axis=-1)
        - jnp.take_along_axis(inner_product, patch_targets[:, None], axis=-1)[:, 0]
    )
    assert jnp.allclose(loss, ref, atol=1e-5, rtol=1e-5), (loss, ref)

    # Case 2: exercises row tiling (grid > 1), a partial last row tile, and C % 128 != 0.
    N2, C2 = 300, 100
    logits2 = jax.random.normal(k3, (N2, C2), dtype=jnp.float32)
    targets2 = jax.random.randint(k4, (N2,), 0, C2, dtype=jnp.int32)
    loss2 = jax.block_until_ready(inner_loss(logits2, targets2, tile_n=128))
    ref2 = jnp.mean(
        jax.nn.logsumexp(logits2, axis=-1)
        - jnp.take_along_axis(logits2, targets2[:, None], axis=-1)[:, 0]
    )
    assert jnp.allclose(loss2, ref2, atol=1e-5, rtol=1e-5), (loss2, ref2)

    print("KERNEL_OK")
</pallas_src>

<mosaic_0001>
module attributes {stable_mosaic.version = 11 : i64} {
  func.func @_ce_rows_kernel(%arg0: i32, %arg1: memref<128x32xf32, #tpu.memory_space<vmem>>, %arg2: memref<1x128xi32, #tpu.memory_space<vmem>>, %arg3: memref<1x128xf32, #tpu.memory_space<vmem>>) attributes {dimension_semantics = [#tpu.dimension_semantics<parallel>], iteration_bounds = array<i64: 1>, scalar_prefetch = 0 : i64, scratch_operands = 0 : i64, tpu.core_type = #tpu.core_type<tc>, window_params = [{transform_indices = @transform_0, window_bounds = array<i64: 128, 32>}, {transform_indices = @transform_1, window_bounds = array<i64: 1, 128>}, {transform_indices = @transform_2, window_bounds = array<i64: 1, 128>}]} {
    %c0 = arith.constant 0 : index
    %c0_0 = arith.constant 0 : index
    %0 = vector.load %arg1[%c0, %c0_0] : memref<128x32xf32, #tpu.memory_space<vmem>>, vector<128x32xf32>
    %c0_1 = arith.constant 0 : index
    %c0_2 = arith.constant 0 : index
    %1 = vector.load %arg2[%c0_1, %c0_2] : memref<1x128xi32, #tpu.memory_space<vmem>>, vector<1x128xi32>
    %2 = tpu.transpose %1, [1, 0] : vector<1x128xi32> -> vector<128x1xi32>
    %cst = arith.constant dense<0xFF800000> : vector<128xf32>
    %3 = vector.multi_reduction <maximumf>, %0, %cst [1] : vector<128x32xf32> to vector<128xf32>
    %4 = vector.shape_cast %3 : vector<128xf32> to vector<128x1xf32>
    %5 = vector.broadcast %4 : vector<128x1xf32> to vector<128x32xf32>
    %6 = arith.subf %0, %5 : vector<128x32xf32>
    %7 = math.exp %6 : vector<128x32xf32>
    %cst_3 = arith.constant dense<0.000000e+00> : vector<128xf32>
    %8 = vector.multi_reduction <add>, %7, %cst_3 [1] : vector<128x32xf32> to vector<128xf32>
    %9 = vector.shape_cast %8 : vector<128xf32> to vector<128x1xf32>
    %10 = tpu.iota {dimensions = array<i32: 1>} : vector<128x32xi32>
    %11 = vector.broadcast %2 : vector<128x1xi32> to vector<128x32xi32>
    %12 = arith.cmpi eq, %10, %11 : vector<128x32xi32>
    %cst_4 = arith.constant 0.000000e+00 : f32
    %13 = vector.broadcast %cst_4 : f32 to vector<128x32xf32>
    %14 = arith.select %12, %6, %13 : vector<128x32xi1>, vector<128x32xf32>
    %cst_5 = arith.constant dense<0.000000e+00> : vector<128xf32>
    %15 = vector.multi_reduction <add>, %14, %cst_5 [1] : vector<128x32xf32> to vector<128xf32>
    %16 = vector.shape_cast %15 : vector<128xf32> to vector<128x1xf32>
    %17 = math.log %9 : vector<128x1xf32>
    %18 = arith.subf %17, %16 : vector<128x1xf32>
    %19 = tpu.transpose %18, [1, 0] : vector<128x1xf32> -> vector<1x128xf32>
    %c0_6 = arith.constant 0 : index
    %c0_7 = arith.constant 0 : index
    %20 = vector.load %arg3[%c0_6, %c0_7] : memref<1x128xf32, #tpu.memory_space<vmem>>, vector<1x128xf32>
    tpu.vector_store %arg3[%c0_6, %c0_7], %19 {strides = array<i32>} : memref<1x128xf32, #tpu.memory_space<vmem>>, vector<1x128xf32>,
    return
  }
  func.func @transform_0(%arg0: i32) -> (i32, i32) {
    %c0_i32 = arith.constant 0 : i32
    %c0_i32_0 = arith.constant 0 : i32
    return %arg0, %c0_i32 : i32, i32
  }
  func.func @transform_1(%arg0: i32) -> (i32, i32) {
    %c0_i32 = arith.constant 0 : i32
    %c0_i32_0 = arith.constant 0 : i32
    return %c0_i32, %arg0 : i32, i32
  }
  func.func @transform_2(%arg0: i32) -> (i32, i32) {
    %c0_i32 = arith.constant 0 : i32
    %c0_i32_0 = arith.constant 0 : i32
    return %c0_i32, %arg0 : i32, i32
  }
}

</mosaic_0001>

<bundles_post_ra>
// kernel: tpu_custom_call.1
= control target key start
LH: loop header
LB: loop body
LE: loop exit
PB: predicated region body
PF: predicated region fallthrough
CT: control target
= control target key end

     0   :  { %7 = vsyncpa [#allocation3], 0  ;;  %s810_s0 = inlined_call_operand.hbm [shape: f32[8,32], index: 0, kind: input, shape index: {}]   ;;  %s811_s1 = inlined_call_operand.vmem [shape: s32[1,128], index: 1, kind: input, shape index: {}]   ;;  %s812_s2 = inlined_call_operand.hbm [shape: f32[1,128], index: 2, kind: output, shape index: {}]  }
   0x1   :  { %8 = vsyncpa [#allocation4], 0 }
   0x2   :  { %13 = vsyncadd [#allocation3], 1920  ;;  %s561_s9 = smov [#allocation2]  }
   0x3   :  { %s14_s10 = sshll.u32 %s561_s9, 4  ;;  %s15_s10 = int_to_ptr.vmem [resolvable:$true] %s14_s10 }
   0x4   :  { %s525_s11 = scalar_lea.vmem %s15_s10, 128  ;;  %s529_s12 = scalar_lea.vmem %s15_s10, 2048 }
   0x5   :  { %p526_p0 = scmp.ne.s32.totalorder %s15_s10, %s525_s11  ;;  %p530_p1 = scmp.lt.s32.totalorder %s15_s10, %s15_s10 }
   0x6   :  { %p531_p2 = scmp.lt.s32.totalorder %s529_s12, %s525_s11 }
   0x8   :  { %p532_p3 = por %p531_p2, %p530_p1 }
   0xa   :  { %p533_p4 = pnand %p532_p3, %p526_p0 }
   0xc   :  { %536 = shalt.err (!%p533_p4)
}
   0xd   :  { %s562_s13 = smov 128   ;;  %s563_s14 = smov 8  }
   0xe   :  { %20 = dma.hbm_to_vmem [thread:$0]  %s810_s0, 128, %s15_s10, [#allocation3], %s562_s13, %s562_s13, %s563_s14  }
   0xf   :  { %557 = dma.done.wait [#allocation3], 2048  }
  0x10   :  { %558 = vsyncadd [#allocation3], 4294965248  ;;  %v564_v0 = vmov 0   ;;  %vm75_vm0 = vcmask 261120   ;;  %v42_v1 = vld [vmem:[%s811_s1] sm:$0x1] }
  0x11   :  { %451 = vset.pattern.permute.xlu1 %v564_v0  ;;  %v587_v2 = vld [vmem:[#allocation2 + $0x8] sm:$0xff]  ;;  %v589_v3 = vld [vmem:[#allocation2 + $0x10] sm:$0xff]  ;;  %43 = vxpose.xlu0.b32.start.end [1/1] (short) %v42_v1, 128  ;;  %v595_v6 = vld [vmem:[#allocation2 + $0x18] sm:$0xff]  ;;  %s565_s0 = smov [#allocation5]  }
  0x12   :  { %v79_v4 = vsel %vm75_vm0, %v587_v2, -inf  ;;  %v82_v5 = vsel %vm75_vm0, %v589_v3, -inf  ;;  %v85_v7 = vsel %vm75_vm0, %v595_v6, -inf  ;;  %v599_v8 = vld [vmem:[#allocation2 + $0x20] sm:$0xff]  ;;  %v603_v10 = vld [vmem:[#allocation2 + $0x28] sm:$0xff]  ;;  %v607_v12 = vld [vmem:[#allocation2 + $0x30] sm:$0xff] }
  0x13   :  { %80 = vmax.xlane.f32.xlu1 %v79_v4  ;;  %v88_v9 = vsel %vm75_vm0, %v599_v8, -inf  ;;  %v91_v11 = vsel %vm75_vm0, %v603_v10, -inf  ;;  %v94_v13 = vsel %vm75_vm0, %v607_v12, -inf  ;;  %v611_v14 = vld [vmem:[#allocation2 + $0x38] sm:$0xff]  ;;  %v615_v16 = vld [vmem:[#allocation2 + $0x40] sm:$0xff]  ;;  %v619_v18 = vld [vmem:[#allocation2 + $0x48] sm:$0xff] }
  0x14   :  { %v97_v15 = vsel %vm75_vm0, %v611_v14, -inf  ;;  %v100_v17 = vsel %vm75_vm0, %v615_v16, -inf  ;;  %v103_v19 = vsel %vm75_vm0, %v619_v18, -inf  ;;  %v623_v20 = vld [vmem:[#allocation2 + $0x50] sm:$0xff]  ;;  %v627_v22 = vld [vmem:[#allocation2 + $0x58] sm:$0xff]  ;;  %v631_v24 = vld [vmem:[#allocation2 + $0x60] sm:$0xff] }
  0x15   :  { %v106_v21 = vsel %vm75_vm0, %v623_v20, -inf  ;;  %v109_v23 = vsel %vm75_vm0, %v627_v22, -inf  ;;  %v112_v25 = vsel %vm75_vm0, %v631_v24, -inf  ;;  %v635_v26 = vld [vmem:[#allocation2 + $0x68] sm:$0xff]  ;;  %v639_v28 = vld [vmem:[#allocation2 + $0x70] sm:$0xff]  ;;  %v643_v30 = vld [vmem:[#allocation2 + $0x78] sm:$0xff] }
  0x16   :  { %v115_v27 = vsel %vm75_vm0, %v635_v26, -inf  ;;  %v118_v29 = vsel %vm75_vm0, %v639_v28, -inf  ;;  %v121_v31 = vsel %vm75_vm0, %v643_v30, -inf  ;;  %v647_v32 = vld [vmem:[#allocation2] sm:$0xff]  ;;  %s437_s1 = sshll.u32 %s565_s0, 4  ;;  %s438_s1 = int_to_ptr.vmem [resolvable:$true] %s437_s1 }
  0x17   :  { %83 = vmax.xlane.f32.xlu1 %v82_v5  ;;  %v76_v33 = vsel %vm75_vm0, %v647_v32, -inf  ;;  %s537_s19 = scalar_lea.vmem %s438_s1, 16  ;;  %s541_s20 = scalar_lea.vmem %s438_s1, 32 }
  0x18   :  { %p538_p5 = scmp.ne.s32.totalorder %s438_s1, %s537_s19  ;;  %p542_p6 = scmp.lt.s32.totalorder %s438_s1, %s438_s1 }
  0x19   :  { %p543_p7 = scmp.lt.s32.totalorder %s541_s20, %s537_s19 }
  0x1b   :  { %86 = vmax.xlane.f32.xlu1 %v85_v7  ;;  %p544_p8 = por %p543_p7, %p542_p6 }
  0x1d   :  { %p545_p9 = pnand %p544_p8, %p538_p5 }
  0x1f   :  { %89 = vmax.xlane.f32.xlu1 %v88_v9 }
  0x23   :  { %92 = vmax.xlane.f32.xlu1 %v91_v11 }
  0x27   :  { %95 = vmax.xlane.f32.xlu1 %v94_v13 }
  0x2b   :  { %98 = vmax.xlane.f32.xlu1 %v97_v15 }
  0x2f   :  { %101 = vmax.xlane.f32.xlu1 %v100_v17 }
  0x33   :  { %104 = vmax.xlane.f32.xlu1 %v103_v19 }
  0x37   :  { %107 = vmax.xlane.f32.xlu1 %v106_v21 }
  0x3a   :  { %452 = vset.pattern.permute.xlu0 %v564_v0 }
  0x3b   :  { %110 = vmax.xlane.f32.xlu1 %v109_v23 }
  0x3f   :  { %113 = vmax.xlane.f32.xlu1 %v112_v25 }
  0x43   :  { %116 = vmax.xlane.f32.xlu1 %v115_v27 }
  0x47   :  { %119 = vmax.xlane.f32.xlu1 %v118_v29 }
  0x4b   :  { %122 = vmax.xlane.f32.xlu1 %v121_v31 }
  0x7a   :  { %77 = vmax.xlane.f32.xlu0 %v76_v33 }
  0x8d   :  { %v59_v34 = vpop.trf.xlu0 }
  0x8e   :  { %223 = vperm.xlu1 %451, %v59_v34  }
  0x91   :  { %v60_v35 = vpop.trf.xlu0 }
  0x92   :  { %226 = vperm.xlu1 %451, %v60_v35  }
  0x95   :  { %v61_v36 = vpop.trf.xlu0 }
  0x96   :  { %229 = vperm.xlu1 %451, %v61_v36  }
  0x99   :  { %v62_v37 = vpop.trf.xlu0 }
  0x9a   :  { %232 = vperm.xlu0 %452, %v62_v37  }
  0x9c   :  { %v651_v38 = vpop.xlane.xlu1 %80 }
  0x9d   :  { %v63_v39 = vpop.trf.xlu0 }
  0x9e   :  { %235 = vperm.xlu1 %451, %v63_v39  }
  0xa0   :  { %v653_v40 = vpop.xlane.xlu1 %83 }
  0xa1   :  { %v64_v41 = vpop.trf.xlu0 }
  0xa2   :  { %238 = vperm.xlu1 %451, %v64_v41  }
  0xa4   :  { %v655_v43 = vpop.xlane.xlu1 %86 }
  0xa5   :  { %v65_v42 = vpop.trf.xlu0 }
  0xa6   :  { %241 = vperm.xlu1 %451, %v65_v42  }
  0xa8   :  { %v657_v45 = vpop.xlane.xlu1 %89 }
  0xa9   :  { %v66_v44 = vpop.trf.xlu0 }
  0xaa   :  { %244 = vperm.xlu1 %451, %v66_v44   ;;  %v708_v44 = vsub.f32 %v587_v2, %v651_v38  ;;  %v721_v38 = vsub.f32 %v595_v6, %v655_v43 }
  0xac   :  { %v659_v48 = vpop.xlane.xlu1 %92 }
  0xad   :  { %v67_v46 = vpop.trf.xlu0 }
  0xae   :  { %247 = vperm.xlu1 %451, %v67_v46  }
  0xb0   :  { %v661_v50 = vpop.xlane.xlu1 %95 }
  0xb1   :  { %v68_v47 = vpop.trf.xlu0  ;;  %v736_v43 = vsub.f32 %v607_v12, %v661_v50 }
  0xb2   :  { %250 = vperm.xlu1 %451, %v68_v47  }
  0xb4   :  { %v99_v53 = vpop.xlane.xlu1 %98 }
  0xb5   :  { %v69_v49 = vpop.trf.xlu0  ;;  %v664_v59 = vsub.f32 %v611_v14, %v99_v53  ;;  %v715_v53 = vsub.f32 %v589_v3, %v653_v40  ;;  %v726_v3 = vsub.f32 %v599_v8, %v657_v45 }
  0xb6   :  { %253 = vperm.xlu1 %451, %v69_v49  }
  0xb7   :  { %v154_v61 = vmul.f32 1.442695, %v664_v59  ;;  %v144_v2 = vmul.f32 1.442695, %v715_v53 }
  0xb8   :  { %v102_v55 = vpop.xlane.xlu1 %101 }
  0xb9   :  { %v70_v51 = vpop.trf.xlu0  ;;  %v668_v62 = vsub.f32 %v615_v16, %v102_v55  ;;  %453 = vpow2.f32 %v154_v61 }
  0xba   :  { %256 = vperm.xlu1 %451, %v70_v51  }
  0xbb   :  { %v156_v0 = vmul.f32 1.442695, %v668_v62 }
  0xbc   :  { %v105_v58 = vpop.xlane.xlu1 %104 }
  0xbd   :  { %v71_v52 = vpop.trf.xlu0  ;;  %v672_v1 = vsub.f32 %v619_v18, %v105_v58  ;;  %455 = vpow2.f32 %v156_v0  ;;  %v731_v58 = vsub.f32 %v603_v10, %v659_v48  ;;  %v152_v0 = vmul.f32 1.442695, %v736_v43 }
  0xbe   :  { %259 = vperm.xlu1 %451, %v71_v52   ;;  %v142_v52 = vmul.f32 1.442695, %v708_v44 }
  0xbf   :  { %v158_v4 = vmul.f32 1.442695, %v672_v1  ;;  %v150_v6 = vmul.f32 1.442695, %v731_v58 }
  0xc0   :  { %v108_v60 = vpop.xlane.xlu1 %107 }
  0xc1   :  { %v72_v54 = vpop.trf.xlu0  ;;  %v676_v5 = vsub.f32 %v623_v20, %v108_v60  ;;  %457 = vpow2.f32 %v158_v4 }
  0xc2   :  { %262 = vperm.xlu1 %451, %v72_v54  }
  0xc3   :  { %v160_v9 = vmul.f32 1.442695, %v676_v5 }
  0xc4   :  { %v111_v63 = vpop.xlane.xlu1 %110 }
  0xc5   :  { %v73_v56 = vpop.trf.xlu0  ;;  %v680_v11 = vsub.f32 %v627_v22, %v111_v63  ;;  %459 = vpow2.f32 %v160_v9 }
  0xc6   :  { %265 = vperm.xlu1 %451, %v73_v56   ;;  %v454_v16 = vpop.eup %453 }
  0xc7   :  { %v162_v14 = vmul.f32 1.442695, %v680_v11  ;;  %v193_v19 = vsel %vm75_vm0, %v454_v16, 0.0 }
  0xc8   :  { %v114_v7 = vpop.xlane.xlu1 %113 }
  0xc9   :  { %v74_v57 = vpop.trf.xlu0  ;;  %v684_v15 = vsub.f32 %v631_v24, %v114_v7  ;;  %461 = vpow2.f32 %v162_v14  ;;  %v220_v14 = vlaneseq }
  0xca   :  { %268 = vperm.xlu0 %452, %v74_v57   ;;  %v456_v20 = vpop.eup %455  ;;  %v148_v57 = vmul.f32 1.442695, %v726_v3 }
  0xcb   :  { %v164_v17 = vmul.f32 1.442695, %v684_v15  ;;  %v196_v24 = vsel %vm75_vm0, %v456_v20, 0.0  ;;  %v752_v20 = vand.u32 127, %v220_v14 }
  0xcc   :  { %v117_v13 = vpop.xlane.xlu1 %116 }
  0xcd   :  { %v688_v18 = vsub.f32 %v635_v26, %v117_v13  ;;  %463 = vpow2.f32 %v164_v17 }
  0xce   :  { %v458_v25 = vpop.eup %457 }
  0xcf   :  { %v166_v22 = vmul.f32 1.442695, %v688_v18  ;;  %v199_v31 = vsel %vm75_vm0, %v458_v25, 0.0 }
  0xd0   :  { %v120_v21 = vpop.xlane.xlu1 %119 }
  0xd1   :  { %v693_v23 = vsub.f32 %v639_v28, %v120_v21  ;;  %465 = vpow2.f32 %v166_v22 }
  0xd2   :  { %v460_v33 = vpop.eup %459 }
  0xd3   :  { %v168_v26 = vmul.f32 1.442695, %v693_v23  ;;  %v202_v28 = vsel %vm75_vm0, %v460_v33, 0.0 }
  0xd4   :  { %v123_v27 = vpop.xlane.xlu1 %122 }
  0xd5   :  { %v698_v29 = vsub.f32 %v643_v30, %v123_v27  ;;  %467 = vpow2.f32 %v168_v26 }
  0xd6   :  { %v462_v35 = vpop.eup %461 }
  0xd7   :  { %v170_v34 = vmul.f32 1.442695, %v698_v29  ;;  %v205_v36 = vsel %vm75_vm0, %v462_v35, 0.0 }
  0xd9   :  { %469 = vpow2.f32 %v170_v34 }
  0xda   :  { %v464_v37 = vpop.eup %463 }
  0xdb   :  { %v208_v39 = vsel %vm75_vm0, %v464_v37, 0.0 }
  0xde   :  { %v466_v30 = vpop.eup %465 }
  0xdf   :  { %v211_v41 = vsel %vm75_vm0, %v466_v30, 0.0 }
  0xe2   :  { %v468_v42 = vpop.eup %467 }
  0xe3   :  { %v214_v46 = vsel %vm75_vm0, %v468_v42, 0.0 }
  0xe6   :  { %v470_v47 = vpop.eup %469 }
  0xe7   :  { %v217_v55 = vsel %vm75_vm0, %v470_v47, 0.0 }
  0xe9   :  { %194 = vadd.xlane.f32.xlu0 %v193_v19 }
  0xed   :  { %197 = vadd.xlane.f32.xlu0 %v196_v24 }
  0xf1   :  { %200 = vadd.xlane.f32.xlu0 %v199_v31 }
  0xf5   :  { %203 = vadd.xlane.f32.xlu0 %v202_v28 }
  0xf9   :  { %206 = vadd.xlane.f32.xlu0 %v205_v36 }
  0xfd   :  { %209 = vadd.xlane.f32.xlu0 %v208_v39 }
 0x101   :  { %212 = vadd.xlane.f32.xlu0 %v211_v41 }
 0x103   :  { %v78_v49 = vpop.xlane.xlu0 %77 }
 0x104   :  { %v124_v51 = vsub.f32 %v647_v32, %v78_v49  ;;  %v146_v32 = vmul.f32 1.442695, %v721_v38 }
 0x105   :  { %215 = vadd.xlane.f32.xlu0 %v214_v46 }
 0x106   :  { %v140_v54 = vmul.f32 1.442695, %v124_v51 }
 0x108   :  { %471 = vpow2.f32 %v140_v54 }
 0x109   :  { %v224_v56 = vpop.permute.xlu1 %223  ;;  %218 = vadd.xlane.f32.xlu0 %v217_v55  ;;  %473 = vpow2.f32 %v142_v52 }
 0x10a   :  { %475 = vpow2.f32 %v144_v2  ;;  %vm270_vm2 = vcmp.eq.s32.totalorder %v752_v20, %v224_v56 }
 0x10b   :  { %477 = vpow2.f32 %v146_v32  ;;  %v286_v33 = vsel %vm270_vm2, %v124_v51, 0.0 }
 0x10c   :  { %479 = vpow2.f32 %v148_v57  ;;  %v302_v28 = vsel %vm75_vm0, %v286_v33, 0.0 }
 0x10d   :  { %v227_v40 = vpop.permute.xlu1 %226  ;;  %481 = vpow2.f32 %v150_v6 }
 0x10e   :  { %483 = vpow2.f32 %v152_v0  ;;  %vm271_vm3 = vcmp.eq.s32.totalorder %v752_v20, %v227_v40 }
 0x10f   :  { %v287_v35 = vsel %vm271_vm3, %v708_v44, 0.0 }
 0x110   :  { %v305_v30 = vsel %vm75_vm0, %v287_v35, 0.0 }
 0x111   :  { %v230_v61 = vpop.permute.xlu1 %229 }
 0x112   :  { %vm272_vm5 = vcmp.eq.s32.totalorder %v752_v20, %v230_v61 }
 0x113   :  { %v288_v41 = vsel %vm272_vm5, %v715_v53, 0.0 }
 0x115   :  { %v472_v60 = vpop.eup %471  ;;  %v233_v37 = vpop.permute.xlu0 %232 }
 0x116   :  { %v172_v8 = vsel %vm75_vm0, %v472_v60, 0.0  ;;  %v474_v45 = vpop.eup %473  ;;  %vm273_vm6 = vcmp.eq.s32.totalorder %v752_v20, %v233_v37 }
 0x117   :  { %173 = vadd.xlane.f32.xlu1 %v172_v8  ;;  %v175_v10 = vsel %vm75_vm0, %v474_v45, 0.0  ;;  %v476_v48 = vpop.eup %475  ;;  %v289_v46 = vsel %vm273_vm6, %v721_v38, 0.0 }
 0x118   :  { %v178_v7 = vsel %vm75_vm0, %v476_v48, 0.0  ;;  %v478_v12 = vpop.eup %477  ;;  %v311_v51 = vsel %vm75_vm0, %v289_v46, 0.0 }
 0x119   :  { %v739_v63 = vpop.permute.xlu1 %235  ;;  %v181_v9 = vsel %vm75_vm0, %v478_v12, 0.0  ;;  %v480_v13 = vpop.eup %479 }
 0x11a   :  { %v184_v17 = vsel %vm75_vm0, %v480_v13, 0.0  ;;  %v482_v19 = vpop.eup %481  ;;  %vm274_vm8 = vcmp.eq.s32.totalorder %v752_v20, %v739_v63 }
 0x11b   :  { %176 = vadd.xlane.f32.xlu1 %v175_v10  ;;  %v187_v22 = vsel %vm75_vm0, %v482_v19, 0.0  ;;  %v484_v24 = vpop.eup %483  ;;  %v290_v52 = vsel %vm274_vm8, %v726_v3, 0.0 }
 0x11c   :  { %v190_v31 = vsel %vm75_vm0, %v484_v24, 0.0 }
 0x11d   :  { %v743_v4 = vpop.permute.xlu1 %238 }
 0x11e   :  { %vm275_vm9 = vcmp.eq.s32.totalorder %v752_v20, %v743_v4 }
 0x11f   :  { %179 = vadd.xlane.f32.xlu1 %v178_v7  ;;  %v291_v55 = vsel %vm275_vm9, %v731_v58, 0.0 }
 0x120   :  { %v317_v2 = vsel %vm75_vm0, %v291_v55, 0.0 }
 0x121   :  { %v746_v50 = vpop.permute.xlu1 %241 }
 0x122   :  { %vm276_vm11 = vcmp.eq.s32.totalorder %v752_v20, %v746_v50 }
 0x123   :  { %182 = vadd.xlane.f32.xlu1 %v181_v9  ;;  %v292_v38 = vsel %vm276_vm11, %v736_v43, 0.0 }
 0x124   :  { %v320_v32 = vsel %vm75_vm0, %v292_v38, 0.0 }
 0x125   :  { %v749_v16 = vpop.permute.xlu1 %244 }
 0x126   :  { %vm277_vm12 = vcmp.eq.s32.totalorder %v752_v20, %v749_v16 }
 0x127   :  { %185 = vadd.xlane.f32.xlu1 %v184_v17 }
 0x129   :  { %v248_v21 = vpop.permute.xlu1 %247 }
 0x12a   :  { %vm278_vm1 = vcmp.eq.s32.totalorder %v752_v20, %v248_v21 }
 0x12b   :  { %188 = vadd.xlane.f32.xlu1 %v187_v22  ;;  %v294_v25 = vsel %vm278_vm1, %v668_v62, 0.0 }
 0x12c   :  { %v326_v27 = vsel %vm75_vm0, %v294_v25, 0.0 }
 0x12d   :  { %v251_v26 = vpop.permute.xlu1 %250  ;;  %327 = vadd.xlane.f32.xlu0 %v326_v27 }
 0x12e   :  { %vm279_vm13 = vcmp.eq.s32.totalorder %v752_v20, %v251_v26 }
 0x12f   :  { %191 = vadd.xlane.f32.xlu1 %v190_v31  ;;  %v295_v40 = vsel %vm279_vm13, %v672_v1, 0.0 }
 0x130   :  { %v329_v57 = vsel %vm75_vm0, %v295_v40, 0.0 }
 0x131   :  { %v254_v34 = vpop.permute.xlu1 %253 }
 0x132   :  { %vm280_vm4 = vcmp.eq.s32.totalorder %v752_v20, %v254_v34 }
 0x133   :  { %303 = vadd.xlane.f32.xlu1 %v302_v28  ;;  %v296_v62 = vsel %vm280_vm4, %v676_v5, 0.0  ;;  %v308_v5 = vsel %vm75_vm0, %v288_v41, 0.0 }
 0x134   :  { %v332_v36 = vsel %vm75_vm0, %v296_v62, 0.0 }
 0x135   :  { %v257_v39 = vpop.permute.xlu1 %256  ;;  %333 = vadd.xlane.f32.xlu0 %v332_v36 }
 0x136   :  { %vm281_vm14 = vcmp.eq.s32.totalorder %v752_v20, %v257_v39 }
 0x137   :  { %306 = vadd.xlane.f32.xlu1 %v305_v30  ;;  %v297_v58 = vsel %vm281_vm14, %v680_v11, 0.0 }
 0x138   :  { %v335_v61 = vsel %vm75_vm0, %v297_v58, 0.0 }
 0x139   :  { %v260_v42 = vpop.permute.xlu1 %259 }
 0x13a   :  { %vm282_vm7 = vcmp.eq.s32.totalorder %v752_v20, %v260_v42 }
 0x13b   :  { %309 = vadd.xlane.f32.xlu1 %v308_v5  ;;  %v298_v44 = vsel %vm282_vm7, %v684_v15, 0.0  ;;  %v314_v15 = vsel %vm75_vm0, %v290_v52, 0.0 }
 0x13c   :  { %v338_v47 = vsel %vm75_vm0, %v298_v44, 0.0 }
 0x13d   :  { %v263_v49 = vpop.permute.xlu1 %262  ;;  %339 = vadd.xlane.f32.xlu0 %v338_v47 }
 0x13e   :  { %vm283_vm15 = vcmp.eq.s32.totalorder %v752_v20, %v263_v49 }
 0x13f   :  { %312 = vadd.xlane.f32.xlu1 %v311_v51 }
 0x141   :  { %v266_v53 = vpop.permute.xlu1 %265 }
 0x142   :  { %vm284_vm10 = vcmp.eq.s32.totalorder %v752_v20, %v266_v53 }
 0x143   :  { %315 = vadd.xlane.f32.xlu1 %v314_v15  ;;  %v300_v54 = vsel %vm284_vm10, %v693_v23, 0.0  ;;  %v293_v23 = vsel %vm277_vm12, %v664_v59, 0.0  ;;  %v299_v59 = vsel %vm283_vm15, %v688_v18, 0.0 }
 0x144   :  { %v344_v56 = vsel %vm75_vm0, %v300_v54, 0.0  ;;  %v323_v3 = vsel %vm75_vm0, %v293_v23, 0.0  ;;  %v341_v6 = vsel %vm75_vm0, %v299_v59, 0.0 }
 0x145   :  { %345 = vadd.xlane.f32.xlu0 %v344_v56  ;;  %v269_v60 = vpop.permute.xlu0 %268 }
 0x146   :  { %vm285_vm1 = vcmp.eq.s32.totalorder %v752_v20, %v269_v60 }
 0x147   :  { %318 = vadd.xlane.f32.xlu1 %v317_v2  ;;  %v301_v1 = vsel %vm285_vm1, %v698_v29, 0.0 }
 0x148   :  { %v347_v43 = vsel %vm75_vm0, %v301_v1, 0.0 }
 0x14b   :  { %321 = vadd.xlane.f32.xlu1 %v320_v32 }
 0x14f   :  { %324 = vadd.xlane.f32.xlu1 %v323_v3 }
 0x153   :  { %330 = vadd.xlane.f32.xlu1 %v329_v57 }
 0x157   :  { %336 = vadd.xlane.f32.xlu1 %v335_v61 }
 0x15b   :  { %342 = vadd.xlane.f32.xlu1 %v341_v6 }
 0x15f   :  { %348 = vadd.xlane.f32.xlu1 %v347_v43 }
 0x172   :  { %v195_v11 = vpop.xlane.xlu0 %194 }
 0x176   :  { %v198_v0 = vpop.xlane.xlu0 %197 }
 0x17a   :  { %v201_v48 = vpop.xlane.xlu0 %200 }
 0x17e   :  { %v204_v7 = vpop.xlane.xlu0 %203 }
 0x182   :  { %v207_v13 = vpop.xlane.xlu0 %206 }
 0x186   :  { %v210_v22 = vpop.xlane.xlu0 %209 }
 0x18a   :  { %v213_v34 = vpop.xlane.xlu0 %212 }
 0x18e   :  { %v216_v30 = vpop.xlane.xlu0 %215 }
 0x192   :  { %v219_v49 = vpop.xlane.xlu0 %218 }
 0x1a0   :  { %v174_v8 = vpop.xlane.xlu1 %173 }
 0x1a1   :  { %485 = vlog2.f32 %v174_v8 }
 0x1a4   :  { %v177_v45 = vpop.xlane.xlu1 %176 }
 0x1a5   :  { %487 = vlog2.f32 %v177_v45 }
 0x1a8   :  { %v180_v63 = vpop.xlane.xlu1 %179 }
 0x1a9   :  { %489 = vlog2.f32 %v180_v63 }
 0x1ac   :  { %v183_v10 = vpop.xlane.xlu1 %182 }
 0x1ad   :  { %491 = vlog2.f32 %v183_v10 }
 0x1ae   :  { %v486_v12 = vpop.eup %485 }
 0x1af   :  { %v351_v29 = vmul.f32 0.6931472, %v486_v12 }
 0x1b0   :  { %v186_v18 = vpop.xlane.xlu1 %185 }
 0x1b1   :  { %493 = vlog2.f32 %v186_v18 }
 0x1b2   :  { %v488_v9 = vpop.eup %487 }
 0x1b3   :  { %v353_v17 = vmul.f32 0.6931472, %v488_v9 }
 0x1b4   :  { %v189_v4 = vpop.xlane.xlu1 %188 }
 0x1b5   :  { %495 = vlog2.f32 %v189_v4 }
 0x1b6   :  { %v490_v19 = vpop.eup %489  ;;  %v328_v2 = vpop.xlane.xlu0 %327 }
 0x1b7   :  { %v355_v24 = vmul.f32 0.6931472, %v490_v19 }
 0x1b8   :  { %v192_v50 = vpop.xlane.xlu1 %191 }
 0x1b9   :  { %497 = vlog2.f32 %v192_v50 }
 0x1ba   :  { %v492_v25 = vpop.eup %491  ;;  %499 = vlog2.f32 %v195_v11 }
 0x1bb   :  { %v357_v31 = vmul.f32 0.6931472, %v492_v25  ;;  %501 = vlog2.f32 %v198_v0 }
 0x1bc   :  { %v304_v14 = vpop.xlane.xlu1 %303  ;;  %503 = vlog2.f32 %v201_v48 }
 0x1bd   :  { %v382_v16 = vsub.f32 %v351_v29, %v304_v14  ;;  %505 = vlog2.f32 %v204_v7 }
 0x1be   :  { %v494_v33 = vpop.eup %493  ;;  %507 = vlog2.f32 %v207_v13  ;;  %v334_v60 = vpop.xlane.xlu0 %333 }
 0x1bf   :  { %398 = vxpose.xlu0.b32.start [1/16] (narrow) %v382_v16, 8  ;;  %v359_v35 = vmul.f32 0.6931472, %v494_v33  ;;  %509 = vlog2.f32 %v210_v22 }
 0x1c0   :  { %v307_v20 = vpop.xlane.xlu1 %306  ;;  %511 = vlog2.f32 %v213_v34 }
 0x1c1   :  { %v383_v21 = vsub.f32 %v353_v17, %v307_v20  ;;  %513 = vlog2.f32 %v216_v30 }
 0x1c2   :  { %v496_v36 = vpop.eup %495  ;;  %515 = vlog2.f32 %v219_v49 }
 0x1c3   :  { %399 = vxpose.xlu0.b32.cont [2/16] (narrow) %v383_v21, 8  ;;  %v361_v41 = vmul.f32 0.6931472, %v496_v36 }
 0x1c4   :  { %v310_v27 = vpop.xlane.xlu1 %309 }
 0x1c5   :  { %v384_v26 = vsub.f32 %v355_v24, %v310_v27 }
 0x1c6   :  { %v498_v42 = vpop.eup %497  ;;  %v340_v45 = vpop.xlane.xlu0 %339 }
 0x1c7   :  { %400 = vxpose.xlu0.b32.cont [3/16] (narrow) %v384_v26, 8  ;;  %v363_v46 = vmul.f32 0.6931472, %v498_v42  ;;  %v500_v47 = vpop.eup %499 }
 0x1c8   :  { %v313_v28 = vpop.xlane.xlu1 %312  ;;  %v502_v53 = vpop.eup %501  ;;  %v365_v15 = vmul.f32 0.6931472, %v500_v47 }
 0x1c9   :  { %v385_v62 = vsub.f32 %v357_v31, %v313_v28  ;;  %v367_v55 = vmul.f32 0.6931472, %v502_v53  ;;  %v504_v38 = vpop.eup %503 }
 0x1ca   :  { %v506_v23 = vpop.eup %505  ;;  %v369_v40 = vmul.f32 0.6931472, %v504_v38 }
 0x1cb   :  { %401 = vxpose.xlu0.b32.cont [4/16] (narrow) %v385_v62, 8  ;;  %v390_v32 = vsub.f32 %v367_v55, %v328_v2  ;;  %v371_v57 = vmul.f32 0.6931472, %v506_v23  ;;  %v508_v61 = vpop.eup %507 }
 0x1cc   :  { %v316_v37 = vpop.xlane.xlu1 %315  ;;  %v510_v6 = vpop.eup %509  ;;  %v373_v43 = vmul.f32 0.6931472, %v508_v61 }
 0x1cd   :  { %v386_v39 = vsub.f32 %v359_v35, %v316_v37  ;;  %v392_v59 = vsub.f32 %v371_v57, %v334_v60  ;;  %v375_v8 = vmul.f32 0.6931472, %v510_v6  ;;  %v512_v63 = vpop.eup %511 }
 0x1ce   :  { %v514_v10 = vpop.eup %513  ;;  %v377_v18 = vmul.f32 0.6931472, %v512_v63  ;;  %v346_v12 = vpop.xlane.xlu0 %345 }
 0x1cf   :  { %402 = vxpose.xlu0.b32.cont [5/16] (narrow) %v386_v39, 8  ;;  %v394_v0 = vsub.f32 %v375_v8, %v340_v45  ;;  %v379_v4 = vmul.f32 0.6931472, %v514_v10  ;;  %v516_v50 = vpop.eup %515 }
 0x1d0   :  { %v319_v5 = vpop.xlane.xlu1 %318  ;;  %v381_v13 = vmul.f32 0.6931472, %v516_v50 }
 0x1d1   :  { %v387_v44 = vsub.f32 %v361_v41, %v319_v5  ;;  %v396_v29 = vsub.f32 %v379_v4, %v346_v12 }
 0x1d3   :  { %403 = vxpose.xlu0.b32.cont [6/16] (narrow) %v387_v44, 8 }
 0x1d4   :  { %v322_v51 = vpop.xlane.xlu1 %321 }
 0x1d5   :  { %v388_v52 = vsub.f32 %v363_v46, %v322_v51 }
 0x1d7   :  { %404 = vxpose.xlu0.b32.cont [7/16] (narrow) %v388_v52, 8 }
 0x1d8   :  { %v325_v54 = vpop.xlane.xlu1 %324 }
 0x1d9   :  { %v389_v56 = vsub.f32 %v365_v15, %v325_v54 }
 0x1db   :  { %405 = vxpose.xlu0.b32.cont [8/16] (narrow) %v389_v56, 8 }
 0x1dc   :  { %v331_v3 = vpop.xlane.xlu1 %330 }
 0x1dd   :  { %v391_v58 = vsub.f32 %v369_v40, %v331_v3 }
 0x1df   :  { %406 = vxpose.xlu0.b32.cont [9/16] (narrow) %v390_v32, 8 }
 0x1e0   :  { %v337_v1 = vpop.xlane.xlu1 %336 }
 0x1e1   :  { %v393_v11 = vsub.f32 %v373_v43, %v337_v1 }
 0x1e3   :  { %407 = vxpose.xlu0.b32.cont [10/16] (narrow) %v391_v58, 8 }
 0x1e4   :  { %v343_v48 = vpop.xlane.xlu1 %342 }
 0x1e5   :  { %v395_v7 = vsub.f32 %v377_v18, %v343_v48 }
 0x1e7   :  { %408 = vxpose.xlu0.b32.cont [11/16] (narrow) %v392_v59, 8 }
 0x1e8   :  { %v349_v9 = vpop.xlane.xlu1 %348 }
 0x1e9   :  { %v397_v14 = vsub.f32 %v381_v13, %v349_v9 }
 0x1eb   :  { %409 = vxpose.xlu0.b32.cont [12/16] (narrow) %v393_v11, 8 }
 0x1ef   :  { %410 = vxpose.xlu0.b32.cont [13/16] (narrow) %v394_v0, 8 }
 0x1f3   :  { %411 = vxpose.xlu0.b32.cont [14/16] (narrow) %v395_v7, 8 }
 0x1f7   :  { %412 = vxpose.xlu0.b32.cont [15/16] (narrow) %v396_v29, 8 }
 0x1fb   :  { %413 = vxpose.xlu0.b32.end [16/16] (narrow) %v397_v14, 8 }
 0x23b   :  { %v414_v16 = vpop.trf.xlu0 }
 0x23c   :  { %430 = vst [vmem:[#allocation5] sm:$0x1] %v414_v16 }
 0x23d   :  { %548 = shalt.err (!%p545_p9)
}
 0x23e   :  { %440 = dma.vmem_to_hbm [thread:$0]  %s438_s1, 16, %s812_s2, [#allocation4]  }
 0x23f   :  { %559 = dma.done.wait [#allocation4], 16  }
 0x240   :  { %560 = vsyncadd [#allocation4], 4294967280 }
 0x241   :  { %444 = vsyncpa [#allocation3], 1 }
 0x242   :  { %445 = vsyncpa [#allocation4], 1 }

</bundles_post_ra>
